<compile_context>
chip_gen: v6e
topology: v6e:2x2x1
jax: 0.10.0
libtpu: 0.0.40
codegen_flags: <defaults>
</compile_context>

<pallas_src>
import jax
import jax.numpy as jnp
from jax.experimental import pallas as pl
from jax.experimental.pallas import tpu as pltpu


def _round_up(x, m):
    return ((x + m - 1) // m) * m


def _frame_head_kernel(x_ref, w_ref, b_ref, out_ref):
    """One row tile of the FrameHead linear: y = x @ W + b."""
    x = x_ref[...].astype(jnp.bfloat16)          # bf16 MXU operands
    y = jnp.dot(x, w_ref[...], preferred_element_type=jnp.float32)  # f32 acc
    y = y + b_ref[...]
    out_ref[...] = y.astype(out_ref.dtype)


def frame_head_forward(s, params, *, dof=3, decouple=False, block_rows=1024):
    """FrameHead forward.

    Args:
      s: [*, c_s] single representation.
      params: weights stored [in, out] ("w"/"b", or "w_rot"/"b_rot"/"w_trans"/
        "b_trans" when decouple=True).
    Returns:
      (rotation_repr, translations):
        dof=3 -> quaternions [*, 4] (leading 1.0, quaternion3_to_4), trans [*, 3]
        dof=4 -> quaternions [*, 4], trans [*, 3]
        dof=6 -> ortho6d [*, 6], trans [*, 3]
    """
    assert dof in (3, 4, 6), "only quaternion (3/4-dof) or ortho6d supported"
    lead = s.shape[:-1]
    c_s = s.shape[-1]
    c_out = dof + 3

    if decouple:
        # rotation_linear and translation_linear fused into one matmul.
        w = jnp.concatenate([params["w_rot"], params["w_trans"]], axis=-1)
        b = jnp.concatenate([params["b_rot"], params["b_trans"]], axis=-1)
    else:
        w = params["w"]
        b = params["b"]

    xf = s.reshape(-1, c_s)
    n_rows = xf.shape[0]

    # Lane-dense padding (multiples of 128) on both feature axes, and row
    # padding to the tile size -- no divisibility assert on the caller.
    c_in_pad = _round_up(c_s, 128)
    c_out_pad = _round_up(c_out, 128)
    block = _round_up(min(block_rows, _round_up(n_rows, 8)), 8)
    n_pad = _round_up(n_rows, block)

    x_pad = jnp.zeros((n_pad, c_in_pad), s.dtype).at[:n_rows, :c_s].set(xf)
    w_pad = (jnp.zeros((c_in_pad, c_out_pad), jnp.bfloat16)
             .at[:c_s, :c_out].set(w.astype(jnp.bfloat16)))
    b_pad = (jnp.zeros((1, c_out_pad), jnp.float32)
             .at[0, :c_out].set(b.astype(jnp.float32).reshape(-1)))

    out = pl.pallas_call(
        _frame_head_kernel,
        out_shape=jax.ShapeDtypeStruct((n_pad, c_out_pad), jnp.float32),
        grid=(n_pad // block,),
        in_specs=[
            pl.BlockSpec((block, c_in_pad), lambda i: (i, 0)),       # x tile
            pl.BlockSpec((c_in_pad, c_out_pad), lambda i: (0, 0)),   # W (resident)
            pl.BlockSpec((1, c_out_pad), lambda i: (0, 0)),          # b (resident)
        ],
        out_specs=pl.BlockSpec((block, c_out_pad), lambda i: (i, 0)),
        compiler_params=pltpu.CompilerParams(
            dimension_semantics=("parallel",)),
    )(x_pad, w_pad, b_pad)

    upd = out[:n_rows, :c_out].astype(s.dtype).reshape(lead + (c_out,))
    rotations = upd[..., :dof]
    translations = upd[..., dof:]

    if dof == 3:
        # quaternion3_to_4: prepend the scalar part (1.0).
        ones = jnp.ones(rotations.shape[:-1] + (1,), rotations.dtype)
        rotations = jnp.concatenate([ones, rotations], axis=-1)
    # TODO(synk): Rigid/Rotation container construction (and ortho6d ->
    # rotation-matrix reconstruction via Rigid.from_tensor_9 for dof=6) is
    # framework plumbing; the raw (rotation_repr, translation) arrays are
    # returned instead.
    return rotations, translations


def _reference_forward(s, params, *, dof=3, decouple=False):
    """Pure-JAX (f32) reference mirroring the PyTorch forward."""
    sf = s.astype(jnp.float32)
    if decouple:
        rot = sf @ params["w_rot"] + params["b_rot"]
        trans = sf @ params["w_trans"] + params["b_trans"]
    else:
        y = sf @ params["w"] + params["b"]
        rot, trans = y[..., :dof], y[..., dof:]
    if dof == 3:
        ones = jnp.ones(rot.shape[:-1] + (1,), rot.dtype)
        rot = jnp.concatenate([ones, rot], axis=-1)
    return rot.astype(s.dtype), trans.astype(s.dtype)


def make_params(key, c_s, dof, decouple):
    """Deterministic synthetic params (init='final' is zeros in AF2; use a
    small nonzero scale so the test is non-trivial)."""
    k1, k2, k3, k4 = jax.random.split(key, 4)
    if decouple:
        return {
            "w_rot": jax.random.normal(k1, (c_s, dof), jnp.float32) * 0.02,
            "b_rot": jax.random.normal(k2, (dof,), jnp.float32) * 0.01,
            "w_trans": jax.random.normal(k3, (c_s, 3), jnp.float32) * 0.02,
            "b_trans": jax.random.normal(k4, (3,), jnp.float32) * 0.01,
        }
    return {
        "w": jax.random.normal(k1, (c_s, dof + 3), jnp.float32) * 0.02,
        "b": jax.random.normal(k2, (dof + 3,), jnp.float32) * 0.01,
    }


if __name__ == "__main__":
    batch, seq, c_s = 2, 8, 128
    key = jax.random.PRNGKey(0)
    kx, kp1, kp2 = jax.random.split(key, 3)
    s = jax.random.normal(kx, (batch, seq, c_s), jnp.float32)

    # Case 1: default head (dof=3 quaternion update, fused linear).
    params3 = make_params(kp1, c_s, dof=3, decouple=False)
    quats, trans = frame_head_forward(s, params3, dof=3, decouple=False,
                                      block_rows=1024)
    quats = jax.block_until_ready(quats)
    trans = jax.block_until_ready(trans)
    rq, rt = _reference_forward(s, params3, dof=3, decouple=False)
    assert quats.shape == (batch, seq, 4) and trans.shape == (batch, seq, 3)
    assert jnp.allclose(quats, rq, atol=2e-2, rtol=2e-2), \
        float(jnp.max(jnp.abs(quats - rq)))
    assert jnp.allclose(trans, rt, atol=2e-2, rtol=2e-2), \
        float(jnp.max(jnp.abs(trans - rt)))

    # Case 2: decoupled ortho6d head (dof=6), exercising the fused two-linear path.
    params6 = make_params(kp2, c_s, dof=6, decouple=True)
    o6, trans6 = frame_head_forward(s, params6, dof=6, decouple=True,
                                    block_rows=1024)
    o6 = jax.block_until_ready(o6)
    trans6 = jax.block_until_ready(trans6)
    ro6, rt6 = _reference_forward(s, params6, dof=6, decouple=True)
    assert o6.shape == (batch, seq, 6) and trans6.shape == (batch, seq, 3)
    assert jnp.allclose(o6, ro6, atol=2e-2, rtol=2e-2), \
        float(jnp.max(jnp.abs(o6 - ro6)))
    assert jnp.allclose(trans6, rt6, atol=2e-2, rtol=2e-2), \
        float(jnp.max(jnp.abs(trans6 - rt6)))

    print("KERNEL_OK")
</pallas_src>

<mosaic_0001>
module attributes {stable_mosaic.version = 11 : i64} {
  func.func @_frame_head_kernel(%arg0: i32, %arg1: memref<16x128xf32, #tpu.memory_space<vmem>>, %arg2: memref<128x128xbf16, #tpu.memory_space<vmem>>, %arg3: memref<1x128xf32, #tpu.memory_space<vmem>>, %arg4: memref<16x128xf32, #tpu.memory_space<vmem>>) attributes {dimension_semantics = [#tpu.dimension_semantics<parallel>], iteration_bounds = array<i64: 1>, scalar_prefetch = 0 : i64, scratch_operands = 0 : i64, tpu.core_type = #tpu.core_type<tc>, window_params = [{transform_indices = @transform_0, window_bounds = array<i64: 16, 128>}, {pipeline_mode = #tpu.pipeline_mode<synchronous>, transform_indices = @transform_1, window_bounds = array<i64: 128, 128>}, {pipeline_mode = #tpu.pipeline_mode<synchronous>, transform_indices = @transform_2, window_bounds = array<i64: 1, 128>}, {transform_indices = @transform_3, window_bounds = array<i64: 16, 128>}]} {
    %c0 = arith.constant 0 : index
    %c0_0 = arith.constant 0 : index
    %0 = vector.load %arg1[%c0, %c0_0] : memref<16x128xf32, #tpu.memory_space<vmem>>, vector<16x128xf32>
    %1 = arith.truncf %0 : vector<16x128xf32> to vector<16x128xbf16>
    %c0_1 = arith.constant 0 : index
    %c0_2 = arith.constant 0 : index
    %2 = vector.load %arg2[%c0_1, %c0_2] : memref<128x128xbf16, #tpu.memory_space<vmem>>, vector<128x128xbf16>
    %cst = arith.constant dense<0.000000e+00> : vector<16x128xf32>
    %3 = tpu.matmul %1, %2, %cst {dimension_numbers = #tpu.dot_dimension_numbers<[1], [0], [0], [1], [0, 0, 1, 1], [], []>} : vector<16x128xbf16>, vector<128x128xbf16>, vector<16x128xf32> -> vector<16x128xf32>
    %c0_3 = arith.constant 0 : index
    %c0_4 = arith.constant 0 : index
    %4 = vector.load %arg3[%c0_3, %c0_4] : memref<1x128xf32, #tpu.memory_space<vmem>>, vector<1x128xf32>
    %5 = vector.broadcast %4 : vector<1x128xf32> to vector<16x128xf32>
    %6 = arith.addf %3, %5 : vector<16x128xf32>
    %c0_5 = arith.constant 0 : index
    %c0_6 = arith.constant 0 : index
    %7 = vector.load %arg4[%c0_5, %c0_6] : memref<16x128xf32, #tpu.memory_space<vmem>>, vector<16x128xf32>
    tpu.vector_store %arg4[%c0_5, %c0_6], %6 {strides = array<i32>} : memref<16x128xf32, #tpu.memory_space<vmem>>, vector<16x128xf32>,
    return
  }
  func.func @transform_0(%arg0: i32) -> (i32, i32) {
    %c0_i32 = arith.constant 0 : i32
    %c0_i32_0 = arith.constant 0 : i32
    return %arg0, %c0_i32 : i32, i32
  }
  func.func @transform_1(%arg0: i32) -> (i32, i32) {
    %c0_i32 = arith.constant 0 : i32
    %c0_i32_0 = arith.constant 0 : i32
    %c0_i32_1 = arith.constant 0 : i32
    return %c0_i32, %c0_i32_0 : i32, i32
  }
  func.func @transform_2(%arg0: i32) -> (i32, i32) {
    %c0_i32 = arith.constant 0 : i32
    %c0_i32_0 = arith.constant 0 : i32
    %c0_i32_1 = arith.constant 0 : i32
    return %c0_i32, %c0_i32_0 : i32, i32
  }
  func.func @transform_3(%arg0: i32) -> (i32, i32) {
    %c0_i32 = arith.constant 0 : i32
    %c0_i32_0 = arith.constant 0 : i32
    return %arg0, %c0_i32 : i32, i32
  }
}

</mosaic_0001>

<bundles_post_ra>
// kernel: tpu_custom_call.1
= control target key start
LH: loop header
LB: loop body
LE: loop exit
PB: predicated region body
PF: predicated region fallthrough
CT: control target
= control target key end

     0   :  { %8 = vsyncpa [#allocation3], 0  ;;  %s347_s0 = inlined_call_operand.hbm [shape: f32[16,128], index: 0, kind: input, shape index: {}]   ;;  %s348_s1 = inlined_call_operand.hbm [shape: bf16[128,128], index: 1, kind: input, shape index: {}]   ;;  %s349_s2 = inlined_call_operand.vmem [shape: f32[1,128], index: 2, kind: input, shape index: {}]   ;;  %s350_s3 = inlined_call_operand.hbm [shape: f32[16,128], index: 3, kind: output, shape index: {}]  }
   0x1   :  { %9 = vsyncpa [#allocation6], 0 }
   0x2   :  { %10 = vsyncpa [#allocation4], 0  ;;  %s300_s12 = smov [#allocation2]  }
   0x3   :  { %s16_s13 = sshll.u32 %s300_s12, 4  ;;  %s17_s13 = int_to_ptr.vmem [resolvable:$true] %s16_s13 }
   0x4   :  { %s242_s14 = scalar_lea.vmem %s17_s13, 256  ;;  %p247_p1 = scmp.lt.s32.totalorder %s17_s13, %s17_s13 }
   0x5   :  { %p243_p0 = scmp.ne.s32.totalorder %s17_s13, %s242_s14  ;;  %p248_p2 = scmp.lt.s32.totalorder %s242_s14, %s242_s14 }
   0x7   :  { %p249_p3 = por %p248_p2, %p247_p1 }
   0x9   :  { %p250_p4 = pnand %p249_p3, %p243_p0 }
   0xb   :  { %253 = shalt.err (!%p250_p4)
}
   0xc   :  { %s301_s15 = smov 128   ;;  %s302_s16 = smov 8  }
   0xd   :  { %22 = dma.hbm_to_vmem [thread:$0]  %s347_s0, 256, %s17_s13, [#allocation3], %s301_s15, %s301_s15, %s302_s16  }
   0xe   :  { %s303_s19 = smov [#allocation5]  }
   0xf   :  { %s28_s20 = sshll.u32 %s303_s19, 4  ;;  %s29_s20 = int_to_ptr.vmem [resolvable:$true] %s28_s20 }
  0x10   :  { %s262_s21 = scalar_lea.vmem %s29_s20, 1024  ;;  %p267_p6 = scmp.lt.s32.totalorder %s29_s20, %s29_s20 }
  0x11   :  { %p263_p5 = scmp.ne.s32.totalorder %s29_s20, %s262_s21  ;;  %p268_p7 = scmp.lt.s32.totalorder %s262_s21, %s262_s21 }
  0x13   :  { %p269_p8 = por %p268_p7, %p267_p6 }
  0x15   :  { %p270_p9 = pnand %p269_p8, %p263_p5 }
  0x17   :  { %273 = shalt.err (!%p270_p9)
}
  0x18   :  { %s304_s22 = smov 64   ;;  %s305_s23 = smov 4  }
  0x19   :  { %34 = dma.hbm_to_vmem [thread:$0]  %s348_s1, 1024, %s29_s20, [#allocation6], %s304_s22, %s304_s22, %s305_s23  }
  0x1a   :  { %294 = dma.done.wait [#allocation3], 256  }
  0x1b   :  { %295 = vsyncadd [#allocation3], 4294967040 }
  0x1c   :  { %296 = dma.done.wait [#allocation6], 1024  }
  0x1d   :  { %297 = vsyncadd [#allocation6], 4294966272  ;;  %v306_v0 = vmov 0.0   ;;  %vm307_vm0 = vmmov 0   ;;  %v226_v1 = vld [vmem:[#allocation5 + $0x38] sm:$0xff]   ;;  %v227_v2 = vld [vmem:[#allocation5 + $0x30] sm:$0xff]  }
  0x1e   :  { %197 = vmatprep.subr.bf16.mxu0 %v306_v0  ;;  %213 = vmatprep.mubr.msk.bf16.mxu0 %vm307_vm0, %v306_v0  ;;  %v228_v3 = vld [vmem:[#allocation5 + $0x28] sm:$0xff]   ;;  %v229_v4 = vld [vmem:[#allocation5 + $0x20] sm:$0xff]   ;;  %v230_v5 = vld [vmem:[#allocation5 + $0x18] sm:$0xff]   ;;  %s308_s26 = smov [#allocation7]  }
  0x1f   :  { %198 = vmatpush3.bf16.msra.mxu0 %v226_v1  ;;  %v231_v6 = vld [vmem:[#allocation5 + $0x10] sm:$0xff]   ;;  %v232_v7 = vld [vmem:[#allocation5 + $0x8] sm:$0xff]   ;;  %v233_v8 = vld [vmem:[#allocation5] sm:$0xff]   ;;  %s166_s27 = sshll.u32 %s308_s26, 4  ;;  %s167_s27 = int_to_ptr.vmem [resolvable:$true] %s166_s27 }
  0x20   :  { %199 = vmatprep.subr.bf16.mxu0 %v306_v0  ;;  %v44_v9 = vld [vmem:[#allocation2] sm:$0xff]  ;;  %v45_v10 = vld [vmem:[#allocation2 + $0x8] sm:$0xff]  ;;  %s274_s28 = scalar_lea.vmem %s167_s27, 256  ;;  %p279_p11 = scmp.lt.s32.totalorder %s167_s27, %s167_s27 }
  0x21   :  { %v46_v11 = vpack.c.bf16 %v45_v10, %v44_v9  ;;  %v179_v12 = vld [vmem:[%s349_s2] ss:$0 sm:$0xff]  ;;  %p275_p10 = scmp.ne.s32.totalorder %s167_s27, %s274_s28  ;;  %p280_p12 = scmp.lt.s32.totalorder %s274_s28, %s274_s28 }
  0x23   :  { %200 = vmatpush3.bf16.msra.mxu0 %v227_v2  ;;  %p281_p13 = por %p280_p12, %p279_p11 }
  0x24   :  { %201 = vmatprep.subr.bf16.mxu0 %v306_v0 }
  0x25   :  { %p282_p0 = pnand %p281_p13, %p275_p10 }
  0x27   :  { %202 = vmatpush3.bf16.msra.mxu0 %v228_v3 }
  0x28   :  { %203 = vmatprep.subr.bf16.mxu0 %v306_v0 }
  0x2b   :  { %204 = vmatpush3.bf16.msra.mxu0 %v229_v4 }
  0x2c   :  { %205 = vmatprep.subr.bf16.mxu0 %v306_v0 }
  0x2f   :  { %206 = vmatpush3.bf16.msra.mxu0 %v230_v5 }
  0x30   :  { %207 = vmatprep.subr.bf16.mxu0 %v306_v0 }
  0x33   :  { %208 = vmatpush3.bf16.msra.mxu0 %v231_v6 }
  0x34   :  { %209 = vmatprep.subr.bf16.mxu0 %v306_v0 }
  0x37   :  { %210 = vmatpush3.bf16.msra.mxu0 %v232_v7 }
  0x38   :  { %211 = vmatprep.subr.bf16.mxu0 %v306_v0 }
  0x3b   :  { %212 = vmatpush3.bf16.msra.mxu0 %v233_v8 }
  0x3e   :  { %214 = vmatmul.mubr.bf16.vlgmr.msra.gmra.mxu0 %v46_v11 }
  0xfe   :  { %v152_v13 = vpop.f32.mrf.mxu0 }
  0xff   :  { %v153_v14 = vadd.f32 %v179_v12, %v152_v13 }
 0x100   :  { %v215_v15 = vpop.f32.mrf.mxu0 }
 0x101   :  { %159 = vst [vmem:[#allocation7] sm:$0xff] %v153_v14 }
 0x102   :  { %v155_v16 = vpop.f32.mrf.mxu0 }
 0x103   :  { %v156_v17 = vadd.f32 %v179_v12, %v155_v16 }
 0x104   :  { %v216_v18 = vpop.f32.mrf.mxu0 }
 0x105   :  { %160 = vst [vmem:[#allocation7 + $0x8] sm:$0xff] %v156_v17 }
 0x106   :  { %285 = shalt.err (!%p282_p0)
}
 0x107   :  { %172 = dma.vmem_to_hbm [thread:$0]  %s167_s27, 256, %s350_s3, [#allocation4], %s301_s15, %s301_s15, %s302_s16  }
 0x108   :  { %298 = dma.done.wait [#allocation4], 256  }
 0x109   :  { %299 = vsyncadd [#allocation4], 4294967040 }
 0x10a   :  { %176 = vsyncpa [#allocation3], 1 }
 0x10b   :  { %177 = vsyncpa [#allocation6], 1 }
 0x10c   :  { %178 = vsyncpa [#allocation4], 1 }

</bundles_post_ra>
